<compile_context>
chip_gen: v7x
topology: tpu7x:2x2x1
jax: 0.10.0
libtpu: 0.0.40
codegen_flags: <defaults>
</compile_context>

<pallas_src>
import math

import jax
import jax.numpy as jnp
from jax.experimental import pallas as pl
from jax.experimental.pallas import tpu as pltpu


def make_lstm_fc_kernel(seq_len: int, hidden_dim: int, b_tile: int):
    H, T, bt = hidden_dim, seq_len, b_tile
    f32 = jnp.float32

    def kernel(x_ref, wih_ref, whh_ref, b_ref, fcw_ref, fcb_ref, out_ref,
               seq_ref):
        l = pl.program_id(1)

        # Layer 0: seed the sequence scratch with the (padded) input block.
        @pl.when(l == 0)
        def _():
            seq_ref[...] = x_ref[0]

        wih = wih_ref[0]    # (maxDin, 4H)
        whh = whh_ref[0]    # (H, 4H)
        bias = b_ref[0]     # (1, 4H)

        # Hoisted input projection: all timesteps at once, bias folded in.
        xg = jnp.dot(seq_ref[...], wih, preferred_element_type=f32) + bias

        h = jnp.zeros((bt, H), f32)
        c = jnp.zeros((bt, H), f32)
        # T is small & static -> unrolled; live state per step is just (h, c).
        # (For large T, switch to lax.fori_loop with pl.ds indexing.)
        for t in range(T):
            gates = xg[t * bt:(t + 1) * bt, :] + jnp.dot(
                h, whh, preferred_element_type=f32)
            # Whole-vreg activations, then static lane slices (i, f, g, o).
            sig = jax.nn.sigmoid(gates)
            tah = jnp.tanh(gates)
            i_g = sig[:, 0 * H:1 * H]
            f_g = sig[:, 1 * H:2 * H]
            g_g = tah[:, 2 * H:3 * H]
            o_g = sig[:, 3 * H:4 * H]
            c = f_g * c + i_g * g_g
            h = o_g * jnp.tanh(c)
            # Hidden-state sequence for the next layer's hoisted matmul.
            seq_ref[t * bt:(t + 1) * bt, 0:H] = h

        # Final layer: Linear on the last timestep's hidden state.
        @pl.when(l == pl.num_programs(1) - 1)
        def _():
            out_ref[...] = (jnp.dot(h, fcw_ref[...], preferred_element_type=f32)
                            + fcb_ref[...])

    return kernel


def init_params(key, input_dim, hidden_dim, output_dim, num_layers):
    """Deterministic parameter init (same shapes / scale as nn.LSTM + nn.Linear)."""
    H = hidden_dim
    params = []
    k = key
    scale = 1.0 / math.sqrt(H)
    for l in range(num_layers):
        din = input_dim if l == 0 else H
        k, k1, k2, k3, k4 = jax.random.split(k, 5)
        w_ih = jax.random.uniform(k1, (4 * H, din), jnp.float32, -scale, scale)
        w_hh = jax.random.uniform(k2, (4 * H, H), jnp.float32, -scale, scale)
        b_ih = jax.random.uniform(k3, (4 * H,), jnp.float32, -scale, scale)
        b_hh = jax.random.uniform(k4, (4 * H,), jnp.float32, -scale, scale)
        # Pre-transpose weights; fold the two LSTM biases into one row vector.
        params += [w_ih.T, w_hh.T, (b_ih + b_hh)[None, :]]
    k, k1, k2 = jax.random.split(k, 3)
    fscale = 1.0 / math.sqrt(H)
    fc_w = jax.random.uniform(k1, (output_dim, H), jnp.float32, -fscale, fscale)
    fc_b = jax.random.uniform(k2, (output_dim,), jnp.float32, -fscale, fscale)
    params += [fc_w.T, fc_b[None, :]]
    return params


def lstm_model_forward(x, params, hidden_dim, output_dim, num_layers,
                       b_tile=None):
    B, T, Din = x.shape
    H = hidden_dim
    f32 = jnp.float32
    max_din = max(Din, H)

    # b_tile = B keeps one batch tile (best for 1-TC v5e/v6e at small B); for
    # v7x with larger batches pick b_tile = B // 2 (multiple of 8) so both
    # TensorCores get work on the "parallel" grid axis.
    if b_tile is None:
        b_tile = B
    assert B % b_tile == 0
    n_bt = B // b_tile

    # Lane-dense, time-major-within-tile input layout:
    # (B, T, Din) -> (n_bt, T*b_tile, max_din), features zero-padded to max_din.
    xp = jnp.pad(x.astype(f32), ((0, 0), (0, 0), (0, max_din - Din)))
    xr = xp.transpose(1, 0, 2)                                # (T, B, maxDin)
    xr = xr.reshape(T, n_bt, b_tile, max_din).transpose(1, 0, 2, 3)
    xr = xr.reshape(n_bt, T * b_tile, max_din)

    # Stack per-layer weights so the layer grid axis can stream them.
    wih_list, whh_list, b_list = [], [], []
    for l in range(num_layers):
        wih, whh, b = params[3 * l:3 * l + 3]   # (din_l,4H), (H,4H), (1,4H)
        din_l = wih.shape[0]
        wih_list.append(jnp.pad(wih, ((0, max_din - din_l), (0, 0))))
        whh_list.append(whh)
        b_list.append(b)
    wih_all = jnp.stack(wih_list)               # (L, maxDin, 4H)
    whh_all = jnp.stack(whh_list)               # (L, H, 4H)
    b_all = jnp.stack(b_list)                   # (L, 1, 4H)
    fc_w, fc_b = params[-2], params[-1]         # (H, out), (1, out)

    kernel = make_lstm_fc_kernel(T, H, b_tile)

    grid_spec = pltpu.PrefetchScalarGridSpec(
        num_scalar_prefetch=0,
        grid=(n_bt, num_layers),
        in_specs=[
            pl.BlockSpec((1, T * b_tile, max_din), lambda b, l: (b, 0, 0)),
            pl.BlockSpec((1, max_din, 4 * H), lambda b, l: (l, 0, 0)),
            pl.BlockSpec((1, H, 4 * H), lambda b, l: (l, 0, 0)),
            pl.BlockSpec((1, 1, 4 * H), lambda b, l: (l, 0, 0)),
            pl.BlockSpec((H, output_dim), lambda b, l: (0, 0)),
            pl.BlockSpec((1, output_dim), lambda b, l: (0, 0)),
        ],
        out_specs=pl.BlockSpec((b_tile, output_dim), lambda b, l: (b, 0)),
        scratch_shapes=[pltpu.VMEM((T * b_tile, max_din), f32)],
    )

    return pl.pallas_call(
        kernel,
        out_shape=jax.ShapeDtypeStruct((B, output_dim), f32),
        grid_spec=grid_spec,
        compiler_params=pltpu.CompilerParams(
            dimension_semantics=("parallel", "arbitrary")),
    )(xr, wih_all, whh_all, b_all, fc_w, fc_b)


def lstm_model_reference(x, params, hidden_dim, output_dim, num_layers):
    """Pure-JAX reference matching PyTorch nn.LSTM semantics."""
    H = hidden_dim
    B, T, _ = x.shape
    seq = x.astype(jnp.float32)
    for l in range(num_layers):
        wih, whh, b = params[3 * l:3 * l + 3]
        h = jnp.zeros((B, H), jnp.float32)
        c = jnp.zeros((B, H), jnp.float32)
        outs = []
        for t in range(T):
            gates = seq[:, t, :] @ wih + h @ whh + b
            i_g = jax.nn.sigmoid(gates[:, 0 * H:1 * H])
            f_g = jax.nn.sigmoid(gates[:, 1 * H:2 * H])
            g_g = jnp.tanh(gates[:, 2 * H:3 * H])
            o_g = jax.nn.sigmoid(gates[:, 3 * H:4 * H])
            c = f_g * c + i_g * g_g
            h = o_g * jnp.tanh(c)
            outs.append(h)
        seq = jnp.stack(outs, axis=1)
    fc_w, fc_b = params[-2], params[-1]
    return seq[:, -1, :] @ fc_w + fc_b


if __name__ == "__main__":
    # Small shapes consistent with the module's forward pass.
    batch, seq_len = 2, 8
    input_dim, hidden_dim, output_dim, num_layers = 16, 32, 8, 2

    key = jax.random.PRNGKey(0)
    kx, kp = jax.random.split(key)
    x = jax.random.normal(kx, (batch, seq_len, input_dim), dtype=jnp.float32)
    params = init_params(kp, input_dim, hidden_dim, output_dim, num_layers)

    out = lstm_model_forward(x, params, hidden_dim, output_dim, num_layers)
    out = jax.block_until_ready(out)

    ref = lstm_model_reference(x, params, hidden_dim, output_dim, num_layers)
    assert out.shape == (batch, output_dim)
    assert jnp.allclose(out, ref, atol=1e-5, rtol=1e-5), "mismatch vs JAX reference"

    print("KERNEL_OK")
</pallas_src>

<mosaic_0001>
module attributes {stable_mosaic.version = 11 : i64} {
  func.func @kernel(%arg0: i32, %arg1: i32, %arg2: memref<1x16x32xf32, #tpu.memory_space<vmem>>, %arg3: memref<1x32x128xf32, #tpu.memory_space<vmem>>, %arg4: memref<1x32x128xf32, #tpu.memory_space<vmem>>, %arg5: memref<1x1x128xf32, #tpu.memory_space<vmem>>, %arg6: memref<32x8xf32, #tpu.memory_space<vmem>>, %arg7: memref<1x8xf32, #tpu.memory_space<vmem>>, %arg8: memref<2x8xf32, #tpu.memory_space<vmem>>, %arg9: memref<16x32xf32, #tpu.memory_space<vmem>>) attributes {dimension_semantics = [#tpu.dimension_semantics<parallel>, #tpu.dimension_semantics<arbitrary>], iteration_bounds = array<i64: 1, 2>, scalar_prefetch = 0 : i64, scratch_operands = 1 : i64, tpu.core_type = #tpu.core_type<tc>, window_params = [{transform_indices = @transform_0, window_bounds = array<i64: 1, 16, 32>}, {transform_indices = @transform_1, window_bounds = array<i64: 1, 32, 128>}, {transform_indices = @transform_2, window_bounds = array<i64: 1, 32, 128>}, {transform_indices = @transform_3, window_bounds = array<i64: 1, 1, 128>}, {pipeline_mode = #tpu.pipeline_mode<synchronous>, transform_indices = @transform_4, window_bounds = array<i64: 32, 8>}, {pipeline_mode = #tpu.pipeline_mode<synchronous>, transform_indices = @transform_5, window_bounds = array<i64: 1, 8>}, {transform_indices = @transform_6, window_bounds = array<i64: 2, 8>}]} {
    %c0_i32 = arith.constant 0 : i32
    %0 = arith.cmpi eq, %arg1, %c0_i32 : i32
    %1 = arith.extui %0 : i1 to i32
    %c0_i32_0 = arith.constant 0 : i32
    %2 = arith.cmpi ne, %1, %c0_i32_0 : i32
    scf.if %2 {
      %c0_39 = arith.constant 0 : index
      %c0_40 = arith.constant 0 : index
      %c0_41 = arith.constant 0 : index
      %170 = vector.load %arg2[%c0_39, %c0_40, %c0_41] : memref<1x16x32xf32, #tpu.memory_space<vmem>>, vector<1x16x32xf32>
      %171 = vector.shape_cast %170 : vector<1x16x32xf32> to vector<16x32xf32>
      %c0_42 = arith.constant 0 : index
      %c0_43 = arith.constant 0 : index
      %172 = vector.load %arg9[%c0_42, %c0_43] : memref<16x32xf32, #tpu.memory_space<vmem>>, vector<16x32xf32>
      tpu.vector_store %arg9[%c0_42, %c0_43], %171 {strides = array<i32>} : memref<16x32xf32, #tpu.memory_space<vmem>>, vector<16x32xf32>,
    } else {
    }
    %c0 = arith.constant 0 : index
    %c0_1 = arith.constant 0 : index
    %c0_2 = arith.constant 0 : index
    %3 = vector.load %arg3[%c0, %c0_1, %c0_2] : memref<1x32x128xf32, #tpu.memory_space<vmem>>, vector<1x32x128xf32>
    %4 = vector.shape_cast %3 : vector<1x32x128xf32> to vector<32x128xf32>
    %c0_3 = arith.constant 0 : index
    %c0_4 = arith.constant 0 : index
    %c0_5 = arith.constant 0 : index
    %5 = vector.load %arg4[%c0_3, %c0_4, %c0_5] : memref<1x32x128xf32, #tpu.memory_space<vmem>>, vector<1x32x128xf32>
    %6 = vector.shape_cast %5 : vector<1x32x128xf32> to vector<32x128xf32>
    %c0_6 = arith.constant 0 : index
    %c0_7 = arith.constant 0 : index
    %c0_8 = arith.constant 0 : index
    %7 = vector.load %arg5[%c0_6, %c0_7, %c0_8] : memref<1x1x128xf32, #tpu.memory_space<vmem>>, vector<1x1x128xf32>
    %8 = vector.shape_cast %7 : vector<1x1x128xf32> to vector<1x128xf32>
    %c0_9 = arith.constant 0 : index
    %c0_10 = arith.constant 0 : index
    %9 = vector.load %arg9[%c0_9, %c0_10] : memref<16x32xf32, #tpu.memory_space<vmem>>, vector<16x32xf32>
    %cst = arith.constant dense<0.000000e+00> : vector<16x128xf32>
    %10 = tpu.matmul %9, %4, %cst {dimension_numbers = #tpu.dot_dimension_numbers<[1], [0], [0], [1], [0, 0, 1, 1], [], []>} : vector<16x32xf32>, vector<32x128xf32>, vector<16x128xf32> -> vector<16x128xf32>
    %11 = vector.broadcast %8 : vector<1x128xf32> to vector<16x128xf32>
    %12 = arith.addf %10, %11 : vector<16x128xf32>
    %cst_11 = arith.constant 0.000000e+00 : f32
    %13 = vector.broadcast %cst_11 : f32 to vector<2x32xf32>
    %cst_12 = arith.constant 0.000000e+00 : f32
    %14 = vector.broadcast %cst_12 : f32 to vector<2x32xf32>
    %15 = vector.extract_strided_slice %12 {offsets = [0, 0], sizes = [2, 128], strides = [1, 1]} : vector<16x128xf32> to vector<2x128xf32>
    %cst_13 = arith.constant dense<0.000000e+00> : vector<2x128xf32>
    %16 = tpu.matmul %13, %6, %cst_13 {dimension_numbers = #tpu.dot_dimension_numbers<[1], [0], [0], [1], [0, 0, 1, 1], [], []>} : vector<2x32xf32>, vector<32x128xf32>, vector<2x128xf32> -> vector<2x128xf32>
    %17 = arith.addf %15, %16 : vector<2x128xf32>
    %18 = arith.negf %17 : vector<2x128xf32>
    %19 = math.exp %18 : vector<2x128xf32>
    %cst_14 = arith.constant 1.000000e+00 : f32
    %20 = vector.broadcast %cst_14 : f32 to vector<2x128xf32>
    %21 = arith.addf %20, %19 : vector<2x128xf32>
    %22 = arith.divf %20, %21 : vector<2x128xf32>
    %23 = math.tanh %17 : vector<2x128xf32>
    %24 = vector.extract_strided_slice %22 {offsets = [0, 0], sizes = [2, 32], strides = [1, 1]} : vector<2x128xf32> to vector<2x32xf32>
    %25 = vector.extract_strided_slice %22 {offsets = [0, 32], sizes = [2, 32], strides = [1, 1]} : vector<2x128xf32> to vector<2x32xf32>
    %26 = vector.extract_strided_slice %23 {offsets = [0, 64], sizes = [2, 32], strides = [1, 1]} : vector<2x128xf32> to vector<2x32xf32>
    %27 = vector.extract_strided_slice %22 {offsets = [0, 96], sizes = [2, 32], strides = [1, 1]} : vector<2x128xf32> to vector<2x32xf32>
    %28 = arith.mulf %25, %14 : vector<2x32xf32>
    %29 = arith.mulf %24, %26 : vector<2x32xf32>
    %30 = arith.addf %28, %29 : vector<2x32xf32>
    %31 = math.tanh %30 : vector<2x32xf32>
    %32 = arith.mulf %27, %31 : vector<2x32xf32>
    %c0_15 = arith.constant 0 : index
    %c0_16 = arith.constant 0 : index
    %33 = vector.load %arg9[%c0_15, %c0_16] : memref<16x32xf32, #tpu.memory_space<vmem>>, vector<2x32xf32>
    tpu.vector_store %arg9[%c0_15, %c0_16], %32 {strides = array<i32>} : memref<16x32xf32, #tpu.memory_space<vmem>>, vector<2x32xf32>,
    %34 = vector.extract_strided_slice %12 {offsets = [2, 0], sizes = [2, 128], strides = [1, 1]} : vector<16x128xf32> to vector<2x128xf32>
    %cst_17 = arith.constant dense<0.000000e+00> : vector<2x128xf32>
    %35 = tpu.matmul %32, %6, %cst_17 {dimension_numbers = #tpu.dot_dimension_numbers<[1], [0], [0], [1], [0, 0, 1, 1], [], []>} : vector<2x32xf32>, vector<32x128xf32>, vector<2x128xf32> -> vector<2x128xf32>
    %36 = arith.addf %34, %35 : vector<2x128xf32>
    %37 = arith.negf %36 : vector<2x128xf32>
    %38 = math.exp %37 : vector<2x128xf32>
    %cst_18 = arith.constant 1.000000e+00 : f32
    %39 = vector.broadcast %cst_18 : f32 to vector<2x128xf32>
    %40 = arith.addf %39, %38 : vector<2x128xf32>
    %41 = arith.divf %39, %40 : vector<2x128xf32>
    %42 = math.tanh %36 : vector<2x128xf32>
    %43 = vector.extract_strided_slice %41 {offsets = [0, 0], sizes = [2, 32], strides = [1, 1]} : vector<2x128xf32> to vector<2x32xf32>
    %44 = vector.extract_strided_slice %41 {offsets = [0, 32], sizes = [2, 32], strides = [1, 1]} : vector<2x128xf32> to vector<2x32xf32>
    %45 = vector.extract_strided_slice %42 {offsets = [0, 64], sizes = [2, 32], strides = [1, 1]} : vector<2x128xf32> to vector<2x32xf32>
    %46 = vector.extract_strided_slice %41 {offsets = [0, 96], sizes = [2, 32], strides = [1, 1]} : vector<2x128xf32> to vector<2x32xf32>
    %47 = arith.mulf %44, %30 : vector<2x32xf32>
    %48 = arith.mulf %43, %45 : vector<2x32xf32>
    %49 = arith.addf %47, %48 : vector<2x32xf32>
    %50 = math.tanh %49 : vector<2x32xf32>
    %51 = arith.mulf %46, %50 : vector<2x32xf32>
    %c2 = arith.constant 2 : index
    %c0_19 = arith.constant 0 : index
    %52 = vector.load %arg9[%c2, %c0_19] : memref<16x32xf32, #tpu.memory_space<vmem>>, vector<2x32xf32>
    tpu.vector_store %arg9[%c2, %c0_19], %51 {strides = array<i32>} : memref<16x32xf32, #tpu.memory_space<vmem>>, vector<2x32xf32>,
    %53 = vector.extract_strided_slice %12 {offsets = [4, 0], sizes = [2, 128], strides = [1, 1]} : vector<16x128xf32> to vector<2x128xf32>
    %cst_20 = arith.constant dense<0.000000e+00> : vector<2x128xf32>
    %54 = tpu.matmul %51, %6, %cst_20 {dimension_numbers = #tpu.dot_dimension_numbers<[1], [0], [0], [1], [0, 0, 1, 1], [], []>} : vector<2x32xf32>, vector<32x128xf32>, vector<2x128xf32> -> vector<2x128xf32>
    %55 = arith.addf %53, %54 : vector<2x128xf32>
    %56 = arith.negf %55 : vector<2x128xf32>
    %57 = math.exp %56 : vector<2x128xf32>
    %cst_21 = arith.constant 1.000000e+00 : f32
    %58 = vector.broadcast %cst_21 : f32 to vector<2x128xf32>
    %59 = arith.addf %58, %57 : vector<2x128xf32>
    %60 = arith.divf %58, %59 : vector<2x128xf32>
    %61 = math.tanh %55 : vector<2x128xf32>
    %62 = vector.extract_strided_slice %60 {offsets = [0, 0], sizes = [2, 32], strides = [1, 1]} : vector<2x128xf32> to vector<2x32xf32>
    %63 = vector.extract_strided_slice %60 {offsets = [0, 32], sizes = [2, 32], strides = [1, 1]} : vector<2x128xf32> to vector<2x32xf32>
    %64 = vector.extract_strided_slice %61 {offsets = [0, 64], sizes = [2, 32], strides = [1, 1]} : vector<2x128xf32> to vector<2x32xf32>
    %65 = vector.extract_strided_slice %60 {offsets = [0, 96], sizes = [2, 32], strides = [1, 1]} : vector<2x128xf32> to vector<2x32xf32>
    %66 = arith.mulf %63, %49 : vector<2x32xf32>
    %67 = arith.mulf %62, %64 : vector<2x32xf32>
    %68 = arith.addf %66, %67 : vector<2x32xf32>
    %69 = math.tanh %68 : vector<2x32xf32>
    %70 = arith.mulf %65, %69 : vector<2x32xf32>
    %c4 = arith.constant 4 : index
    %c0_22 = arith.constant 0 : index
    %71 = vector.load %arg9[%c4, %c0_22] : memref<16x32xf32, #tpu.memory_space<vmem>>, vector<2x32xf32>
    tpu.vector_store %arg9[%c4, %c0_22], %70 {strides = array<i32>} : memref<16x32xf32, #tpu.memory_space<vmem>>, vector<2x32xf32>,
    %72 = vector.extract_strided_slice %12 {offsets = [6, 0], sizes = [2, 128], strides = [1, 1]} : vector<16x128xf32> to vector<2x128xf32>
    %cst_23 = arith.constant dense<0.000000e+00> : vector<2x128xf32>
    %73 = tpu.matmul %70, %6, %cst_23 {dimension_numbers = #tpu.dot_dimension_numbers<[1], [0], [0], [1], [0, 0, 1, 1], [], []>} : vector<2x32xf32>, vector<32x128xf32>, vector<2x128xf32> -> vector<2x128xf32>
    %74 = arith.addf %72, %73 : vector<2x128xf32>
    %75 = arith.negf %74 : vector<2x128xf32>
    %76 = math.exp %75 : vector<2x128xf32>
    %cst_24 = arith.constant 1.000000e+00 : f32
    %77 = vector.broadcast %cst_24 : f32 to vector<2x128xf32>
    %78 = arith.addf %77, %76 : vector<2x128xf32>
    %79 = arith.divf %77, %78 : vector<2x128xf32>
    %80 = math.tanh %74 : vector<2x128xf32>
    %81 = vector.extract_strided_slice %79 {offsets = [0, 0], sizes = [2, 32], strides = [1, 1]} : vector<2x128xf32> to vector<2x32xf32>
    %82 = vector.extract_strided_slice %79 {offsets = [0, 32], sizes = [2, 32], strides = [1, 1]} : vector<2x128xf32> to vector<2x32xf32>
    %83 = vector.extract_strided_slice %80 {offsets = [0, 64], sizes = [2, 32], strides = [1, 1]} : vector<2x128xf32> to vector<2x32xf32>
    %84 = vector.extract_strided_slice %79 {offsets = [0, 96], sizes = [2, 32], strides = [1, 1]} : vector<2x128xf32> to vector<2x32xf32>
    %85 = arith.mulf %82, %68 : vector<2x32xf32>
    %86 = arith.mulf %81, %83 : vector<2x32xf32>
    %87 = arith.addf %85, %86 : vector<2x32xf32>
    %88 = math.tanh %87 : vector<2x32xf32>
    %89 = arith.mulf %84, %88 : vector<2x32xf32>
    %c6 = arith.constant 6 : index
    %c0_25 = arith.constant 0 : index
    %90 = vector.load %arg9[%c6, %c0_25] : memref<16x32xf32, #tpu.memory_space<vmem>>, vector<2x32xf32>
    tpu.vector_store %arg9[%c6, %c0_25], %89 {strides = array<i32>} : memref<16x32xf32, #tpu.memory_space<vmem>>, vector<2x32xf32>,
    %91 = vector.extract_strided_slice %12 {offsets = [8, 0], sizes = [2, 128], strides = [1, 1]} : vector<16x128xf32> to vector<2x128xf32>
    %cst_26 = arith.constant dense<0.000000e+00> : vector<2x128xf32>
    %92 = tpu.matmul %89, %6, %cst_26 {dimension_numbers = #tpu.dot_dimension_numbers<[1], [0], [0], [1], [0, 0, 1, 1], [], []>} : vector<2x32xf32>, vector<32x128xf32>, vector<2x128xf32> -> vector<2x128xf32>
    %93 = arith.addf %91, %92 : vector<2x128xf32>
    %94 = arith.negf %93 : vector<2x128xf32>
    %95 = math.exp %94 : vector<2x128xf32>
    %cst_27 = arith.constant 1.000000e+00 : f32
    %96 = vector.broadcast %cst_27 : f32 to vector<2x128xf32>
    %97 = arith.addf %96, %95 : vector<2x128xf32>
    %98 = arith.divf %96, %97 : vector<2x128xf32>
    %99 = math.tanh %93 : vector<2x128xf32>
    %100 = vector.extract_strided_slice %98 {offsets = [0, 0], sizes = [2, 32], strides = [1, 1]} : vector<2x128xf32> to vector<2x32xf32>
    %101 = vector.extract_strided_slice %98 {offsets = [0, 32], sizes = [2, 32], strides = [1, 1]} : vector<2x128xf32> to vector<2x32xf32>
    %102 = vector.extract_strided_slice %99 {offsets = [0, 64], sizes = [2, 32], strides = [1, 1]} : vector<2x128xf32> to vector<2x32xf32>
    %103 = vector.extract_strided_slice %98 {offsets = [0, 96], sizes = [2, 32], strides = [1, 1]} : vector<2x128xf32> to vector<2x32xf32>
    %104 = arith.mulf %101, %87 : vector<2x32xf32>
    %105 = arith.mulf %100, %102 : vector<2x32xf32>
    %106 = arith.addf %104, %105 : vector<2x32xf32>
    %107 = math.tanh %106 : vector<2x32xf32>
    %108 = arith.mulf %103, %107 : vector<2x32xf32>
    %c8 = arith.constant 8 : index
    %c0_28 = arith.constant 0 : index
    %109 = vector.load %arg9[%c8, %c0_28] : memref<16x32xf32, #tpu.memory_space<vmem>>, vector<2x32xf32>
    tpu.vector_store %arg9[%c8, %c0_28], %108 {strides = array<i32>} : memref<16x32xf32, #tpu.memory_space<vmem>>, vector<2x32xf32>,
    %110 = vector.extract_strided_slice %12 {offsets = [10, 0], sizes = [2, 128], strides = [1, 1]} : vector<16x128xf32> to vector<2x128xf32>
    %cst_29 = arith.constant dense<0.000000e+00> : vector<2x128xf32>
    %111 = tpu.matmul %108, %6, %cst_29 {dimension_numbers = #tpu.dot_dimension_numbers<[1], [0], [0], [1], [0, 0, 1, 1], [], []>} : vector<2x32xf32>, vector<32x128xf32>, vector<2x128xf32> -> vector<2x128xf32>
    %112 = arith.addf %110, %111 : vector<2x128xf32>
    %113 = arith.negf %112 : vector<2x128xf32>
    %114 = math.exp %113 : vector<2x128xf32>
    %cst_30 = arith.constant 1.000000e+00 : f32
    %115 = vector.broadcast %cst_30 : f32 to vector<2x128xf32>
    %116 = arith.addf %115, %114 : vector<2x128xf32>
    %117 = arith.divf %115, %116 : vector<2x128xf32>
    %118 = math.tanh %112 : vector<2x128xf32>
    %119 = vector.extract_strided_slice %117 {offsets = [0, 0], sizes = [2, 32], strides = [1, 1]} : vector<2x128xf32> to vector<2x32xf32>
    %120 = vector.extract_strided_slice %117 {offsets = [0, 32], sizes = [2, 32], strides = [1, 1]} : vector<2x128xf32> to vector<2x32xf32>
    %121 = vector.extract_strided_slice %118 {offsets = [0, 64], sizes = [2, 32], strides = [1, 1]} : vector<2x128xf32> to vector<2x32xf32>
    %122 = vector.extract_strided_slice %117 {offsets = [0, 96], sizes = [2, 32], strides = [1, 1]} : vector<2x128xf32> to vector<2x32xf32>
    %123 = arith.mulf %120, %106 : vector<2x32xf32>
    %124 = arith.mulf %119, %121 : vector<2x32xf32>
    %125 = arith.addf %123, %124 : vector<2x32xf32>
    %126 = math.tanh %125 : vector<2x32xf32>
    %127 = arith.mulf %122, %126 : vector<2x32xf32>
    %c10 = arith.constant 10 : index
    %c0_31 = arith.constant 0 : index
    %128 = vector.load %arg9[%c10, %c0_31] : memref<16x32xf32, #tpu.memory_space<vmem>>, vector<2x32xf32>
    tpu.vector_store %arg9[%c10, %c0_31], %127 {strides = array<i32>} : memref<16x32xf32, #tpu.memory_space<vmem>>, vector<2x32xf32>,
    %129 = vector.extract_strided_slice %12 {offsets = [12, 0], sizes = [2, 128], strides = [1, 1]} : vector<16x128xf32> to vector<2x128xf32>
    %cst_32 = arith.constant dense<0.000000e+00> : vector<2x128xf32>
    %130 = tpu.matmul %127, %6, %cst_32 {dimension_numbers = #tpu.dot_dimension_numbers<[1], [0], [0], [1], [0, 0, 1, 1], [], []>} : vector<2x32xf32>, vector<32x128xf32>, vector<2x128xf32> -> vector<2x128xf32>
    %131 = arith.addf %129, %130 : vector<2x128xf32>
    %132 = arith.negf %131 : vector<2x128xf32>
    %133 = math.exp %132 : vector<2x128xf32>
    %cst_33 = arith.constant 1.000000e+00 : f32
    %134 = vector.broadcast %cst_33 : f32 to vector<2x128xf32>
    %135 = arith.addf %134, %133 : vector<2x128xf32>
    %136 = arith.divf %134, %135 : vector<2x128xf32>
    %137 = math.tanh %131 : vector<2x128xf32>
    %138 = vector.extract_strided_slice %136 {offsets = [0, 0], sizes = [2, 32], strides = [1, 1]} : vector<2x128xf32> to vector<2x32xf32>
    %139 = vector.extract_strided_slice %136 {offsets = [0, 32], sizes = [2, 32], strides = [1, 1]} : vector<2x128xf32> to vector<2x32xf32>
    %140 = vector.extract_strided_slice %137 {offsets = [0, 64], sizes = [2, 32], strides = [1, 1]} : vector<2x128xf32> to vector<2x32xf32>
    %141 = vector.extract_strided_slice %136 {offsets = [0, 96], sizes = [2, 32], strides = [1, 1]} : vector<2x128xf32> to vector<2x32xf32>
    %142 = arith.mulf %139, %125 : vector<2x32xf32>
    %143 = arith.mulf %138, %140 : vector<2x32xf32>
    %144 = arith.addf %142, %143 : vector<2x32xf32>
    %145 = math.tanh %144 : vector<2x32xf32>
    %146 = arith.mulf %141, %145 : vector<2x32xf32>
    %c12 = arith.constant 12 : index
    %c0_34 = arith.constant 0 : index
    %147 = vector.load %arg9[%c12, %c0_34] : memref<16x32xf32, #tpu.memory_space<vmem>>, vector<2x32xf32>
    tpu.vector_store %arg9[%c12, %c0_34], %146 {strides = array<i32>} : memref<16x32xf32, #tpu.memory_space<vmem>>, vector<2x32xf32>,
    %148 = vector.extract_strided_slice %12 {offsets = [14, 0], sizes = [2, 128], strides = [1, 1]} : vector<16x128xf32> to vector<2x128xf32>
    %cst_35 = arith.constant dense<0.000000e+00> : vector<2x128xf32>
    %149 = tpu.matmul %146, %6, %cst_35 {dimension_numbers = #tpu.dot_dimension_numbers<[1], [0], [0], [1], [0, 0, 1, 1], [], []>} : vector<2x32xf32>, vector<32x128xf32>, vector<2x128xf32> -> vector<2x128xf32>
    %150 = arith.addf %148, %149 : vector<2x128xf32>
    %151 = arith.negf %150 : vector<2x128xf32>
    %152 = math.exp %151 : vector<2x128xf32>
    %cst_36 = arith.constant 1.000000e+00 : f32
    %153 = vector.broadcast %cst_36 : f32 to vector<2x128xf32>
    %154 = arith.addf %153, %152 : vector<2x128xf32>
    %155 = arith.divf %153, %154 : vector<2x128xf32>
    %156 = math.tanh %150 : vector<2x128xf32>
    %157 = vector.extract_strided_slice %155 {offsets = [0, 0], sizes = [2, 32], strides = [1, 1]} : vector<2x128xf32> to vector<2x32xf32>
    %158 = vector.extract_strided_slice %155 {offsets = [0, 32], sizes = [2, 32], strides = [1, 1]} : vector<2x128xf32> to vector<2x32xf32>
    %159 = vector.extract_strided_slice %156 {offsets = [0, 64], sizes = [2, 32], strides = [1, 1]} : vector<2x128xf32> to vector<2x32xf32>
    %160 = vector.extract_strided_slice %155 {offsets = [0, 96], sizes = [2, 32], strides = [1, 1]} : vector<2x128xf32> to vector<2x32xf32>
    %161 = arith.mulf %158, %144 : vector<2x32xf32>
    %162 = arith.mulf %157, %159 : vector<2x32xf32>
    %163 = arith.addf %161, %162 : vector<2x32xf32>
    %164 = math.tanh %163 : vector<2x32xf32>
    %165 = arith.mulf %160, %164 : vector<2x32xf32>
    %c14 = arith.constant 14 : index
    %c0_37 = arith.constant 0 : index
    %166 = vector.load %arg9[%c14, %c0_37] : memref<16x32xf32, #tpu.memory_space<vmem>>, vector<2x32xf32>
    tpu.vector_store %arg9[%c14, %c0_37], %165 {strides = array<i32>} : memref<16x32xf32, #tpu.memory_space<vmem>>, vector<2x32xf32>,
    %c1_i32 = arith.constant 1 : i32
    %167 = arith.cmpi eq, %arg1, %c1_i32 : i32
    %168 = arith.extui %167 : i1 to i32
    %c0_i32_38 = arith.constant 0 : i32
    %169 = arith.cmpi ne, %168, %c0_i32_38 : i32
    scf.if %169 {
      %c0_39 = arith.constant 0 : index
      %c0_40 = arith.constant 0 : index
      %170 = vector.load %arg6[%c0_39, %c0_40] : memref<32x8xf32, #tpu.memory_space<vmem>>, vector<32x8xf32>
      %cst_41 = arith.constant dense<0.000000e+00> : vector<2x8xf32>
      %171 = tpu.matmul %165, %170, %cst_41 {dimension_numbers = #tpu.dot_dimension_numbers<[1], [0], [0], [1], [0, 0, 1, 1], [], []>} : vector<2x32xf32>, vector<32x8xf32>, vector<2x8xf32> -> vector<2x8xf32>
      %c0_42 = arith.constant 0 : index
      %c0_43 = arith.constant 0 : index
      %172 = vector.load %arg7[%c0_42, %c0_43] : memref<1x8xf32, #tpu.memory_space<vmem>>, vector<1x8xf32>
      %173 = vector.broadcast %172 : vector<1x8xf32> to vector<2x8xf32>
      %174 = arith.addf %171, %173 : vector<2x8xf32>
      %c0_44 = arith.constant 0 : index
      %c0_45 = arith.constant 0 : index
      %175 = vector.load %arg8[%c0_44, %c0_45] : memref<2x8xf32, #tpu.memory_space<vmem>>, vector<2x8xf32>
      tpu.vector_store %arg8[%c0_44, %c0_45], %174 {strides = array<i32>} : memref<2x8xf32, #tpu.memory_space<vmem>>, vector<2x8xf32>,
    } else {
    }
    return
  }
  func.func @transform_0(%arg0: i32, %arg1: i32) -> (i32, i32, i32) {
    %c0_i32 = arith.constant 0 : i32
    %c0_i32_0 = arith.constant 0 : i32
    %c0_i32_1 = arith.constant 0 : i32
    return %arg0, %c0_i32, %c0_i32_0 : i32, i32, i32
  }
  func.func @transform_1(%arg0: i32, %arg1: i32) -> (i32, i32, i32) {
    %c0_i32 = arith.constant 0 : i32
    %c0_i32_0 = arith.constant 0 : i32
    %c0_i32_1 = arith.constant 0 : i32
    return %arg1, %c0_i32, %c0_i32_0 : i32, i32, i32
  }
  func.func @transform_2(%arg0: i32, %arg1: i32) -> (i32, i32, i32) {
    %c0_i32 = arith.constant 0 : i32
    %c0_i32_0 = arith.constant 0 : i32
    %c0_i32_1 = arith.constant 0 : i32
    return %arg1, %c0_i32, %c0_i32_0 : i32, i32, i32
  }
  func.func @transform_3(%arg0: i32, %arg1: i32) -> (i32, i32, i32) {
    %c0_i32 = arith.constant 0 : i32
    %c0_i32_0 = arith.constant 0 : i32
    %c0_i32_1 = arith.constant 0 : i32
    return %arg1, %c0_i32, %c0_i32_0 : i32, i32, i32
  }
  func.func @transform_4(%arg0: i32, %arg1: i32) -> (i32, i32) {
    %c0_i32 = arith.constant 0 : i32
    %c0_i32_0 = arith.constant 0 : i32
    %c0_i32_1 = arith.constant 0 : i32
    return %c0_i32, %c0_i32_0 : i32, i32
  }
  func.func @transform_5(%arg0: i32, %arg1: i32) -> (i32, i32) {
    %c0_i32 = arith.constant 0 : i32
    %c0_i32_0 = arith.constant 0 : i32
    %c0_i32_1 = arith.constant 0 : i32
    return %c0_i32, %c0_i32_0 : i32, i32
  }
  func.func @transform_6(%arg0: i32, %arg1: i32) -> (i32, i32) {
    %c0_i32 = arith.constant 0 : i32
    %c0_i32_0 = arith.constant 0 : i32
    return %arg0, %c0_i32 : i32, i32
  }
}

</mosaic_0001>

<bundles_post_ra>
// kernel: tpu_custom_call.1
= control target key start
LH: loop header
LB: loop body
LE: loop exit
PB: predicated region body
PF: predicated region fallthrough
CT: control target
= control target key end

     0   :  { %11 = vsyncpa [#allocation4], 0  ;;  %s2521_s0 = inlined_call_operand.vmem [shape: f32[1,16,32], index: 0, kind: input, shape index: {}]   ;;  %s2522_s1 = inlined_call_operand.hbm [shape: f32[2,32,128], index: 1, kind: input, shape index: {}]   ;;  %s2523_s2 = inlined_call_operand.hbm [shape: f32[2,32,128], index: 2, kind: input, shape index: {}]   ;;  %s2524_s3 = inlined_call_operand.vmem [shape: f32[2,1,128], index: 3, kind: input, shape index: {}]   ;;  %s2525_s4 = inlined_call_operand.vmem [shape: f32[32,8], index: 4, kind: input, shape index: {}]   ;;  %s2526_s5 = inlined_call_operand.vmem [shape: f32[1,8], index: 5, kind: input, shape index: {}]   ;;  %s2527_s6 = inlined_call_operand.hbm [shape: f32[2,8], index: 6, kind: output, shape index: {}]  }
   0x1   :  { %13 = vsyncpa [#allocation4 + $0x1], 0 }
   0x2   :  { %14 = vsyncpa [#allocation7], 0 }
   0x3   :  { %16 = vsyncpa [#allocation7 + $0x1], 0 }
   0x4   :  { %17 = vsyncpa [#allocation5], 0  ;;  %s2142_s21 = smov 0   ;;  %s2144_s22 = smov 0  }
   0x5   :  { %s2146_s23 = smov 0   ;;  %s2148_s24 = smov 0  }
   0x6   :  { %s2150_s25 = smov 0   ;;  %s2152_s26 = smov 0  }
   0x7 LB: > { %s2528_s27 = sadd.s32 4294967295, %s2091_s26   ;;  %s32_s28 = sadd.s32 1, %s2087_s25  ;;  %s2091_s26 = sphi %s2152_s26, %s23_s26   ;;  %s2087_s25 = sphi %s2150_s25, %s2541_s25   ;;  %s2083_s24 = sphi %s2148_s24, %s2540_s24   ;;  %s2079_s23 = sphi %s2146_s23, %s2539_s23   ;;  %s2075_s22 = sphi %s2144_s22, %s2538_s22   ;;  %s2071_s21 = sphi %s2142_s21, %s2537_s21  }
   0x8   : > { %p33_p0 = scmp.ge.s32.totalorder %s32_s28, 2  ;;  %s68_s29 = sadd.s32 1, %s2079_s23 }
   0x9   : > { %p75_p1 = scmp.ne.s32.totalorder %s2079_s23, %s2075_s22  ;;  %p76_p2 = scmp.eq.s32.totalorder %s2091_s26, 0 }
   0xa   : > { %s2543_s28 = smov (%p33_p0, %s32_s28), 0  ;;  %p81_p4 = scmp.ne.s32.totalorder %s2075_s22, %s2071_s21 }
   0xb   : > { %p2178_p3 = por %p76_p2, %p75_p1  ;;  %s65_s7 = ssub.s32 %s2087_s25, %s2543_s28 }
   0xc   : > { %p82_p5 = scmp.eq.s32.totalorder %s2528_s27, 0  ;;  %p66_p6 = scmp.eq.s32.totalorder %s65_s7, 0 }
   0xd   : > { %p1820_p8 = scmp.lt.s32.totalorder %s2091_s26, 2  ;;  %s2196_s10 = sand.u32 1, %s2079_s23  }
   0xe   : > { %p2187_p7 = por %p82_p5, %p81_p4  ;;  %s1580_s11 = sshll.u32 %s2087_s25, 9 }
   0xf   : > { %s2193_s9 = scalar_select %p66_p6, %s2079_s23, %s68_s29  }
  0x10   : > { %s2531_s8 = scalar_select %p2187_p7, 1, 0 }
  0x11   : > { %s1545_s12 = sshll.u32 %s2196_s10, 5  ;;  %s2205_s15 = scalar_lea.hbm %s2522_s1, %s1580_s11 }
  0x12   : > { %s243_s16 = scalar_lea.vmem [#allocation3], %s1545_s12  ;;  %p2211_p9 = pnand %p1820_p8, %p2178_p3 }
  0x13   : > { %s250_s17 = sshll.u32 %s243_s16, 4  ;;  %s240_s19 = scalar_lea.sflag [#allocation4], %s2196_s10  ;;  %s2215_s17 = int_to_ptr.vmem [resolvable:$true] %s250_s17 }
  0x14   : > { %s1947_s20 = scalar_lea.hbm %s2205_s15, 512  ;;  %p1949_p11 = pneg %p2211_p9 }
  0x15   : > { %p1948_p10 = scmp.ne.s32.totalorder %s2205_s15, %s1947_s20  ;;  %s1952_s30 = scalar_lea.hbm %s2522_s1, 1024 }
  0x16   : > { %p1953_p0 = scmp.lt.u32.totalorder %s2205_s15, %s2522_s1  ;;  %p1954_p1 = scmp.lt.u32.totalorder %s1952_s30, %s1947_s20 }
  0x17   : > { %p1950_p12 = pnand %p1949_p11, %p1948_p10  ;;  %p1956_p3 = scmp.lt.u32.totalorder %s1947_s20, %s2205_s15 }
  0x18   : > { %p1955_p2 = por %p1954_p1, %p1953_p0 }
  0x19   : > { %p1951_p13 = pneg %p1950_p12 }
  0x1a   : > { %p1957_p4 = por %p1956_p3, %p1955_p2 }
  0x1c   : > { %p1958_p5 = pnand %p1957_p4, %p1951_p13 }
  0x1e   : > { %1961 = shalt.err (!%p1958_p5)
}
  0x1f   : > { %s1962_s14 = scalar_lea.vmem %s2215_s17, 512  ;;  %s2093_s16 = smov [#allocation3]  }
  0x20   : > { %p1963_p6 = scmp.ne.s32.totalorder %s2215_s17, %s1962_s14  ;;  %s1967_s21 = sshll.u32 %s2093_s16, 4  ;;  %s1968_s21 = int_to_ptr.vmem [resolvable:$false] %s1967_s21 }
  0x21   : > { %s1969_s29 = scalar_lea.vmem %s1968_s21, 1024  ;;  %p1970_p12 = scmp.lt.s32.totalorder %s2215_s17, %s1968_s21 }
  0x22   : > { %p1965_p8 = pnand %p1963_p6, %p1949_p11  ;;  %p1971_p0 = scmp.lt.s32.totalorder %s1969_s29, %s1962_s14 }
  0x24   : > { %p1966_p10 = pneg %p1965_p8  ;;  %p1972_p1 = por %p1971_p0, %p1970_p12 }
  0x26   : > { %p1973_p2 = pnand %p1972_p1, %p1966_p10 }
  0x28   : > { %1976 = shalt.err (!%p1973_p2)
}
  0x29   : > { %s2094_s20 = smov 128   ;;  %s2095_s30 = smov 8  }
  0x2a   : > { %1816 = dma.hbm_to_vmem [thread:$0]  (!%p2211_p9), %s2205_s15, 512, %s2215_s17, %s240_s19, %s2094_s20, %s2094_s20, %s2095_s30  }
  0x2b   : > { %p1551_p13 = scmp.ge.s32.totalorder %s2091_s26, 1  ;;  %p285_p3 = scmp.lt.s32.totalorder %s2091_s26, 3 }
  0x2c   : > { %s2259_s16 = scalar_lea.hbm %s2523_s2, %s1580_s11  ;;  %s264_s21 = scalar_lea.vmem [#allocation6], %s1545_s12 }
  0x2d   : > { %p2250_p4 = pnand %p1551_p13, %p285_p3  ;;  %s271_s29 = sshll.u32 %s264_s21, 4  ;;  %s2263_s29 = int_to_ptr.vmem [resolvable:$true] %s271_s29 }
  0x2e   : > { %s261_s15 = scalar_lea.sflag [#allocation7], %s2196_s10  ;;  %s1977_s17 = scalar_lea.hbm %s2259_s16, 512 }
  0x2f   : > { %p1978_p5 = scmp.ne.s32.totalorder %s2259_s16, %s1977_s17  ;;  %s1982_s11 = scalar_lea.hbm %s2523_s2, 1024 }
  0x30   : > { %p1983_p10 = scmp.lt.u32.totalorder %s2259_s16, %s2523_s2  ;;  %p1984_p12 = scmp.lt.u32.totalorder %s1982_s11, %s1977_s17 }
  0x31   : > { %p1980_p6 = pnand %p1978_p5, %p1949_p11  ;;  %p1986_p1 = scmp.lt.u32.totalorder %s1977_s17, %s2259_s16 }
  0x32   : > { %p1985_p0 = por %p1984_p12, %p1983_p10 }
  0x33   : > { %p1981_p8 = pneg %p1980_p6 }
  0x34   : > { %p1987_p2 = por %p1986_p1, %p1985_p0 }
  0x36   : > { %p1988_p13 = pnand %p1987_p2, %p1981_p8 }
  0x38   : > { %1991 = shalt.err (!%p1988_p13)
}
  0x39   : > { %s1992_s12 = scalar_lea.vmem %s2263_s29, 512  ;;  %s2096_s21 = smov [#allocation6]  }
  0x3a   : > { %p1993_p3 = scmp.ne.s32.totalorder %s2263_s29, %s1992_s12  ;;  %s1997_s19 = sshll.u32 %s2096_s21, 4  ;;  %s1998_s19 = int_to_ptr.vmem [resolvable:$false] %s1997_s19 }
  0x3b   : > { %s1999_s27 = scalar_lea.vmem %s1998_s19, 1024  ;;  %p2000_p7 = scmp.lt.s32.totalorder %s2263_s29, %s1998_s19 }
  0x3c   : > { %p1995_p5 = pnand %p1993_p3, %p1949_p11  ;;  %p2001_p10 = scmp.lt.s32.totalorder %s1999_s27, %s1992_s12 }
  0x3e   : > { %p1996_p6 = pneg %p1995_p5  ;;  %p2002_p12 = por %p2001_p10, %p2000_p7 }
  0x40   : > { %p2003_p0 = pnand %p2002_p12, %p1996_p6 }
  0x42   : > { %2006 = shalt.err (!%p2003_p0)
}
  0x43   : > { %1819 = dma.hbm_to_vmem [thread:$0]  (!%p2211_p9), %s2259_s16, 512, %s2263_s29, %s261_s15, %s2094_s20, %s2094_s20, %s2095_s30  }
  0x44   : > { %289 = sbr.rel (%p2250_p4) target bundleno = 5984 (0x1760), region = 44  ;;  %s291_s17 = sand.u32 (!%p2250_p4), 1, %s2075_s22  }
  0x45   : > { %s1552_s13 = sshll.u32 (!%p2250_p4), %s291_s17, 5  ;;  %s292_s11 = scalar_lea.sflag (!%p2250_p4), [#allocation4], %s291_s17 }
  0x46   : > { %s295_s14 = scalar_lea.vmem (!%p2250_p4), [#allocation3], %s1552_s13  ;;  %p2534_p7 = scmp.ne.s32.totalorder (!%p2250_p4), %s2531_s8, 0 }
  0x4b   : > { %2058 = dma.done.wait (%p2534_p7), %s292_s11, 512  }
  0x4c   : > { %2060 = vsyncadd (%p2534_p7), %s292_s11, 4294966784  ;;  %s301_s18 = scalar_lea.sflag [#allocation7], %s291_s17  ;;  %s304_s10 = scalar_lea.vmem [#allocation6], %s1552_s13 }
  0x4d   : > { %2062 = dma.done.wait (%p2534_p7), %s301_s18, 512  }
  0x4e   : > { %2064 = vsyncadd (%p2534_p7), %s301_s18, 4294966784  ;;  %p346_p9 = scmp.lt.s32.totalorder %s2083_s24, 1  ;;  %p1554_p11 = scmp.ne.s32.totalorder %s2083_s24, 0 }
  0x4f   : > { %v353_v0 = vld [vmem:[%s2521_s0] sm:$0xff] (!%p1554_p11)  ;;  %vm355_vm0 = vcmask (!%p1554_p11), 261120   ;;  %v354_v1 = vld [vmem:[%s2521_s0 + $0x8] sm:$0xff] (!%p1554_p11) }
  0x50   : > { %s2307_s20 = scalar_select %p346_p9, %s2083_s24, 1 }
  0x51   : > { %352 = sbr.rel (%p1554_p11) target bundleno = 88 (0x58), region = 56  ;;  %356 = vst.msk [vmem:[#allocation2] sm:$0xff] (!%p1554_p11), %vm355_vm0, %v353_v0  ;;  %357 = vst.msk [vmem:[#allocation2 + $0x8] sm:$0xff] (!%p1554_p11), %vm355_vm0, %v354_v1 }
  0x52   : > { %s348_s16 = scalar_lea.vmem %s2524_s3, %s2307_s20 }
  0x58 PF: > { %v358_v2 = vld [vmem:[%s295_s14] sm:$0xff]  ;;  %v359_v3 = vld [vmem:[%s295_s14 + $0x8] sm:$0xff]  ;;  %vm375_vm1 = vcmask 261120   ;;  %v2097_v6 = vmov 0.0|0.0   ;;  %v360_v8 = vld [vmem:[%s295_s14 + $0x10] sm:$0xff]  ;;  %vm2098_vm2 = vmmov 0  }
  0x59   : > { %v362_v4 = vld [vmem:[%s304_s10] sm:$0xff]  ;;  %v1743_v5 = vpack.c.bf16 %v359_v3, %v358_v2  ;;  %1751 = vmatprep.subr.bf16.mxu1 %v2097_v6  ;;  %v363_v7 = vld [vmem:[%s304_s10 + $0x8] sm:$0xff]  ;;  %v361_v9 = vld [vmem:[%s295_s14 + $0x18] sm:$0xff]  ;;  %v2099_v15 = vmov 0.0   ;;  %s2100_s27 = smov 64   ;;  %s2101_s17 = smov 32  }
  0x5a   : > { %v2321_v10 = vpack.c.bf16 %v363_v7, %v362_v4  ;;  %v1747_v11 = vpack.c.bf16 %v361_v9, %v360_v8  ;;  %v367_v12 = vld [vmem:[#allocation2] sm:$0xff]  ;;  %v365_v14 = vld [vmem:[%s304_s10 + $0x18] sm:$0xff]  ;;  %1652 = vmatprep.mubr.msk.f32.mxu1 %vm2098_vm2, %v2099_v15  ;;  %vm559_vm3 = vcmask 254976   ;;  %vm668_vm4 = vcmask 257026   ;;  %p1573_p4 = scmp.ne.s32.totalorder %s2083_s24, 1 }
  0x5b   : > { %v364_v13 = vld [vmem:[%s304_s10 + $0x10] sm:$0xff]  ;;  %1744 = vmatprep.subr.bf16.mxu0 %v1743_v5  ;;  %1641 = vmatprep.mubr.msk.f32.mxu0 %vm375_vm1, %v367_v12  ;;  %v368_v17 = vld [vmem:[#allocation2 + $0x8] sm:$0xff]  ;;  %vm892_vm5 = vcmask 261126   ;;  %vm780_vm6 = vcmask 259076   ;;  %s2103_s24 = smov (!%p1573_p4), 32   ;;  %vm2104_vm7 = vmmov (!%p1573_p4), 0  }
  0x5c   : > { %1746 = vmatpush3.bf16.msra.mxu0 %v1743_v5  ;;  %1753 = vmatpush3.bf16.msra.mxu1 %v2321_v10  ;;  %v2327_v16 = vpack.c.bf16 %v365_v14, %v364_v13  ;;  %v1555_v18 = vld [vmem:[%s348_s16] ss:$0 sm:$0xff]  ;;  %vm1422_vm8 = vcmask (!%p1573_p4), 58368  }
  0x5d   : > { %1748 = vmatprep.subr.bf16.mxu0 %v1747_v11  ;;  %1754 = vmatprep.subr.bf16.mxu1 %v2097_v6 }
  0x60   : > { %1750 = vmatpush3.bf16.msra.mxu0 %v1747_v11  ;;  %1756 = vmatpush3.bf16.msra.mxu1 %v2327_v16 }
  0x61   : > { %1757 = vmatprep.subr.bf16.mxu0 %v2097_v6  ;;  %1763 = vmatprep.subr.bf16.mxu1 %v2097_v6 }
  0x63   : > { %1642 = vmatmul.mubr.msk.f32.vlgmr.msra.gmra.mrb[0].mxu0 %vm375_vm1, %v368_v17  ;;  %1653 = vmatmul.mubr.f32.vlgmr.msra.gmra.mrb[0].mxu1 %v2099_v15 }
  0x64   : > { %1759 = vmatpush3.bf16.msra.mxu0 %v2321_v10  ;;  %1663 = vmatprep.mubr.msk.f32.mxu0 %vm2098_vm2, %v2099_v15 }
  0x65   : > { %1760 = vmatprep.subr.bf16.mxu0 %v2097_v6  ;;  %1765 = vmatpush3.bf16.msra.mxu1 %v2321_v10 }
  0x66   : > { %1766 = vmatprep.subr.bf16.mxu1 %v2097_v6  ;;  %1674 = vmatprep.mubr.msk.f32.mxu1 %vm2098_vm2, %v2099_v15 }
  0x68   : > { %1762 = vmatpush3.bf16.msra.mxu0 %v2327_v16 }
  0x69   : > { %1768 = vmatpush3.bf16.msra.mxu1 %v2327_v16  ;;  %1769 = vmatprep.subr.bf16.mxu0 %v2097_v6 }
  0x6a   : > { %1775 = vmatprep.subr.bf16.mxu1 %v2097_v6 }
 0x136   : > { %v1643_v19 = vpop.f32.mrb[0].mxu0  ;;  %v526_v20 = vpop.f32.mrb[0].mxu1 }
 0x137   : > { %v2352_v21 = vadd.f32 %v1643_v19, %v1555_v18  ;;  %v448_v22 = vpop.f32.mrb[1].mxu0  ;;  %v1654_v23 = vpop.f32.mrb[1].mxu1 }
 0x138   : > { %v2354_v24 = vadd.f32 %v1555_v18, %v448_v22 }
 0x13a   : > { %v530_v25 = vadd.f32 %v526_v20, %v2354_v24 }
 0x13c   : > { %1883 = vtanh.f32 %v530_v25  ;;  %v1558_v27 = vmul.f32 -1.442695, %v530_v25 }
 0x13e   : > { %1885 = vpow2.f32 %v1558_v27 }
 0x146   : > { %v1884_v26 = vpop.eup %1883 }
 0x147   : > { %540 = vrot.lane.b32.xlu0 %v1884_v26, %s2100_s27 }
 0x148   : > { %v1886_v28 = vpop.eup %1885 }
 0x149   : > { %v534_v29 = vadd.f32 1.0, %v1886_v28 }
 0x14b   : > { %1887 = vrcp.f32 %v534_v29 }
 0x155   : > { %v1888_v30 = vpop.eup %1887 }
 0x156   : > { %v538_v33 = vmul.f32 0.0, %v1888_v30 }
 0x1b9   : > { %v541_v31 = vpop.permute.xlu0 %540 }
 0x1ba   : > { %v543_v32 = vmul.f32 %v1888_v30, %v541_v31 }
 0x1bc   : > { %545 = vrot.lane.b32.xlu0 %v543_v32, %s2101_s17 }
 0x22e   : > { %v546_v34 = vpop.permute.xlu0 %545 }
 0x22f   : > { %v548_v35 = vadd.f32 %v546_v34, %v538_v33 }
 0x231   : > { %1889 = vtanh.f32 %v548_v35  ;;  %v645_v51 = vrot.slane %v548_v35, 6 }
 0x23b   : > { %v1890_v36 = vpop.eup %1889 }
 0x23c   : > { %551 = vrot.lane.b32.xlu1 %v1890_v36, %s2100_s27 }
 0x2ae   : > { %v552_v37 = vpop.permute.xlu1 %551 }
 0x2af   : > { %v554_v38 = vmul.f32 %v1888_v30, %v552_v37 }
 0x2b1   : > { %556 = vrot.lane.b32.xlu1 %v554_v38, %s2101_s17 }
 0x323   : > { %v557_v39 = vpop.permute.xlu1 %556 }
 0x324   : > { %560 = vst.msk [vmem:[#allocation2] sm:$0x3] %vm559_vm3, %v557_v39  ;;  %1664 = vmatmul.mubr.msk.f32.vlgmr.msra.gmra.mrb[2].mxu0 %vm375_vm1, %v557_v39 }
 0x325   : > { %1771 = vmatpush3.bf16.msra.mxu0 %v2321_v10  ;;  %1685 = vmatprep.mubr.msk.f32.mxu0 %vm2098_vm2, %v2099_v15 }
 0x326   : > { %1772 = vmatprep.subr.bf16.mxu0 %v2097_v6 }
 0x329   : > { %1774 = vmatpush3.bf16.msra.mxu0 %v2327_v16 }
 0x32a   : > { %1781 = vmatprep.subr.bf16.mxu0 %v2097_v6 }
 0x3f7   : > { %v629_v40 = vpop.f32.mrb[2].mxu0 }
 0x3f8   : > { %v634_v41 = vrot.slane %v629_v40, 6  ;;  %v1665_v42 = vpop.f32.mrb[3].mxu0 }
 0x3fa   : > { %v636_v43 = vadd.f32 %v634_v41, %v2354_v24 }
 0x3fc   : > { %1891 = vtanh.f32 %v636_v43  ;;  %v1560_v45 = vmul.f32 -1.442695, %v636_v43 }
 0x3fe   : > { %1893 = vpow2.f32 %v1560_v45 }
 0x406   : > { %v1892_v44 = vpop.eup %1891 }
 0x407   : > { %649 = vrot.lane.b32.xlu0 %v1892_v44, %s2100_s27 }
 0x408   : > { %v1894_v46 = vpop.eup %1893 }
 0x409   : > { %v640_v47 = vadd.f32 1.0, %v1894_v46 }
 0x40b   : > { %1895 = vrcp.f32 %v640_v47 }
 0x415   : > { %v1896_v48 = vpop.eup %1895 }
 0x416   : > { %v647_v52 = vmul.f32 %v1896_v48, %v645_v51 }
 0x479   : > { %v650_v49 = vpop.permute.xlu0 %649 }
 0x47a   : > { %v652_v50 = vmul.f32 %v1896_v48, %v650_v49 }
 0x47c   : > { %654 = vrot.lane.b32.xlu1 %v652_v50, %s2101_s17 }
 0x4ee   : > { %v655_v53 = vpop.permute.xlu1 %654 }
 0x4ef   : > { %v657_v54 = vadd.f32 %v655_v53, %v647_v52 }
 0x4f1   : > { %1897 = vtanh.f32 %v657_v54  ;;  %v757_v8 = vrot.slane %v657_v54, 6 }
 0x4fb   : > { %v1898_v55 = vpop.eup %1897 }
 0x4fc   : > { %660 = vrot.lane.b32.xlu0 %v1898_v55, %s2100_s27 }
 0x56e   : > { %v661_v56 = vpop.permute.xlu0 %660 }
 0x56f   : > { %v2373_v57 = vmul.f32 %v1896_v48, %v661_v56 }
 0x571   : > { %v670_v58 = vrot.slane %v2373_v57, 2 }
 0x573   : > { %671 = vrot.lane.b32.xlu1 %v670_v58, %s2101_s17 }
 0x5e5   : > { %v672_v59 = vpop.permute.xlu1 %671 }
 0x5e6   : > { %1675 = vmatmul.mubr.msk.f32.vlgmr.msra.gmra.mrb[2].mxu1 %vm375_vm1, %v672_v59 }
 0x5e7   : > { %1777 = vmatpush3.bf16.msra.mxu1 %v2321_v10  ;;  %1696 = vmatprep.mubr.msk.f32.mxu1 %vm2098_vm2, %v2099_v15 }
 0x5e8   : > { %1778 = vmatprep.subr.bf16.mxu1 %v2097_v6 }
 0x5eb   : > { %1780 = vmatpush3.bf16.msra.mxu1 %v2327_v16 }
 0x5ec   : > { %1787 = vmatprep.subr.bf16.mxu1 %v2097_v6 }
 0x6b9   : > { %v741_v60 = vpop.f32.mrb[2].mxu1 }
 0x6ba   : > { %v746_v61 = vrot.slane %v741_v60, 4  ;;  %v1676_v62 = vpop.f32.mrb[3].mxu1 }
 0x6bc   : > { %v748_v63 = vadd.f32 %v746_v61, %v2354_v24 }
 0x6be   : > { %1899 = vtanh.f32 %v748_v63  ;;  %v1562_v1 = vmul.f32 -1.442695, %v748_v63 }
 0x6c0   : > { %1901 = vpow2.f32 %v1562_v1 }
 0x6c8   : > { %v1900_v0 = vpop.eup %1899 }
 0x6c9   : > { %761 = vrot.lane.b32.xlu0 %v1900_v0, %s2100_s27 }
 0x6ca   : > { %v1902_v2 = vpop.eup %1901 }
 0x6cb   : > { %v752_v3 = vadd.f32 1.0, %v1902_v2 }
 0x6cd   : > { %1903 = vrcp.f32 %v752_v3 }
 0x6d7   : > { %v1904_v4 = vpop.eup %1903 }
 0x6d8   : > { %v759_v9 = vmul.f32 %v1904_v4, %v757_v8 }
 0x73b   : > { %v762_v5 = vpop.permute.xlu0 %761 }
 0x73c   : > { %v764_v7 = vmul.f32 %v1904_v4, %v762_v5 }
 0x73e   : > { %766 = vrot.lane.b32.xlu1 %v764_v7, %s2101_s17 }
 0x7b0   : > { %v767_v11 = vpop.permute.xlu1 %766 }
 0x7b1   : > { %v769_v12 = vadd.f32 %v767_v11, %v759_v9 }
 0x7b3   : > { %1905 = vtanh.f32 %v769_v12  ;;  %v869_v33 = vrot.slane %v769_v12, 6 }
 0x7bd   : > { %v1906_v13 = vpop.eup %1905 }
 0x7be   : > { %772 = vrot.lane.b32.xlu0 %v1906_v13, %s2100_s27 }
 0x830   : > { %v773_v14 = vpop.permute.xlu0 %772 }
 0x831   : > { %v2388_v17 = vmul.f32 %v1904_v4, %v773_v14 }
 0x833   : > { %v782_v18 = vrot.slane %v2388_v17, 4 }
 0x835   : > { %783 = vrot.lane.b32.xlu1 %v782_v18, %s2101_s17 }
 0x8a7   : > { %v784_v19 = vpop.permute.xlu1 %783 }
 0x8a8   : > { %1686 = vmatmul.mubr.msk.f32.vlgmr.msra.gmra.mrb[4].mxu0 %vm375_vm1, %v784_v19 }
 0x8a9   : > { %1783 = vmatpush3.bf16.msra.mxu0 %v2321_v10  ;;  %1707 = vmatprep.mubr.msk.f32.mxu0 %vm2098_vm2, %v2099_v15 }
 0x8aa   : > { %1784 = vmatprep.subr.bf16.mxu0 %v2097_v6 }
 0x8ad   : > { %1786 = vmatpush3.bf16.msra.mxu0 %v2327_v16 }
 0x8ae   : > { %1793 = vmatprep.subr.bf16.mxu0 %v2097_v6 }
 0x97b   : > { %v853_v20 = vpop.f32.mrb[4].mxu0 }
 0x97c   : > { %v858_v22 = vrot.slane %v853_v20, 2  ;;  %v1687_v23 = vpop.f32.mrb[5].mxu0 }
 0x97e   : > { %v860_v25 = vadd.f32 %v858_v22, %v2354_v24 }
 0x980   : > { %1907 = vtanh.f32 %v860_v25  ;;  %v1564_v27 = vmul.f32 -1.442695, %v860_v25 }
 0x982   : > { %1909 = vpow2.f32 %v1564_v27 }
 0x98a   : > { %v1908_v26 = vpop.eup %1907 }
 0x98b   : > { %873 = vrot.lane.b32.xlu0 %v1908_v26, %s2100_s27 }
 0x98c   : > { %v1910_v28 = vpop.eup %1909 }
 0x98d   : > { %v864_v29 = vadd.f32 1.0, %v1910_v28 }
 0x98f   : > { %1911 = vrcp.f32 %v864_v29 }
 0x999   : > { %v1912_v30 = vpop.eup %1911 }
 0x99a   : > { %v871_v34 = vmul.f32 %v1912_v30, %v869_v33 }
 0x9fd   : > { %v874_v31 = vpop.permute.xlu0 %873 }
 0x9fe   : > { %v876_v32 = vmul.f32 %v1912_v30, %v874_v31 }
 0xa00   : > { %878 = vrot.lane.b32.xlu1 %v876_v32, %s2101_s17 }
 0xa72   : > { %v879_v35 = vpop.permute.xlu1 %878 }
 0xa73   : > { %v881_v36 = vadd.f32 %v879_v35, %v871_v34 }
 0xa75   : > { %1913 = vtanh.f32 %v881_v36  ;;  %v978_v51 = vrot.slane %v881_v36, 6 }
 0xa7f   : > { %v1914_v24 = vpop.eup %1913 }
 0xa80   : > { %884 = vrot.lane.b32.xlu0 %v1914_v24, %s2100_s27 }
 0xaf2   : > { %v885_v37 = vpop.permute.xlu0 %884 }
 0xaf3   : > { %v2403_v38 = vmul.f32 %v1912_v30, %v885_v37 }
 0xaf5   : > { %v894_v39 = vrot.slane %v2403_v38, 6 }
 0xaf7   : > { %895 = vrot.lane.b32.xlu1 %v894_v39, %s2101_s17 }
 0xb69   : > { %v896_v40 = vpop.permute.xlu1 %895 }
 0xb6a   : > { %1697 = vmatmul.mubr.msk.f32.vlgmr.msra.gmra.mrb[4].mxu1 %vm375_vm1, %v896_v40 }
 0xb6b   : > { %1789 = vmatpush3.bf16.msra.mxu1 %v2321_v10  ;;  %1718 = vmatprep.mubr.msk.f32.mxu1 %vm2098_vm2, %v2099_v15 }
 0xb6c   : > { %1790 = vmatprep.subr.bf16.mxu1 %v2097_v6 }
 0xb6f   : > { %1792 = vmatpush3.bf16.msra.mxu1 %v2327_v16 }
 0xc3d   : > { %v965_v41 = vpop.f32.mrb[4].mxu1 }
 0xc3e   : > { %v969_v42 = vadd.f32 %v965_v41, %v2352_v21  ;;  %v1698_v43 = vpop.f32.mrb[5].mxu1 }
 0xc40   : > { %1915 = vtanh.f32 %v969_v42  ;;  %v1566_v45 = vmul.f32 -1.442695, %v969_v42 }
 0xc42   : > { %1917 = vpow2.f32 %v1566_v45 }
 0xc4a   : > { %v1916_v44 = vpop.eup %1915 }
 0xc4b   : > { %982 = vrot.lane.b32.xlu0 %v1916_v44, %s2100_s27 }
 0xc4c   : > { %v1918_v46 = vpop.eup %1917 }
 0xc4d   : > { %v973_v47 = vadd.f32 1.0, %v1918_v46 }
 0xc4f   : > { %1919 = vrcp.f32 %v973_v47 }
 0xc59   : > { %v1920_v48 = vpop.eup %1919 }
 0xc5a   : > { %v980_v52 = vmul.f32 %v1920_v48, %v978_v51 }
 0xcbd   : > { %v983_v49 = vpop.permute.xlu0 %982 }
 0xcbe   : > { %v985_v50 = vmul.f32 %v1920_v48, %v983_v49 }
 0xcc0   : > { %987 = vrot.lane.b32.xlu1 %v985_v50, %s2101_s17 }
 0xd32   : > { %v988_v53 = vpop.permute.xlu1 %987 }
 0xd33   : > { %v990_v54 = vadd.f32 %v988_v53, %v980_v52 }
 0xd35   : > { %1921 = vtanh.f32 %v990_v54 }
 0xd3f   : > { %v1922_v55 = vpop.eup %1921 }
 0xd40   : > { %993 = vrot.lane.b32.xlu0 %v1922_v55, %s2100_s27 }
 0xdb2   : > { %v994_v56 = vpop.permute.xlu0 %993 }
 0xdb3   : > { %v996_v58 = vmul.f32 %v1920_v48, %v994_v56 }
 0xdb5   : > { %998 = vrot.lane.b32.xlu1 %v996_v58, %s2101_s17 }
 0xe27   : > { %v999_v59 = vpop.permute.xlu1 %998 }
 0xe28   : > { %1001 = vst.msk [vmem:[#allocation2 + $0x8] sm:$0x3] %vm559_vm3, %v999_v59  ;;  %1708 = vmatmul.mubr.msk.f32.vlgmr.msra.gmra.mrb[6].mxu0 %vm375_vm1, %v999_v59 }
 0xe29   : > { %1795 = vmatpush3.bf16.msra.mxu0 %v2321_v10  ;;  %1729 = vmatprep.mubr.msk.f32.mxu0 %vm2098_vm2, %v2099_v15 }
 0xe2a   : > { %1796 = vmatprep.subr.bf16.mxu0 %v2097_v6  ;;  %v1086_v6 = vrot.slane %v990_v54, 6 }
 0xe2d   : > { %1798 = vmatpush3.bf16.msra.mxu0 %v2327_v16 }
 0xefb   : > { %v1070_v60 = vpop.f32.mrb[6].mxu0 }
 0xefc   : > { %v1075_v61 = vrot.slane %v1070_v60, 6  ;;  %v1709_v62 = vpop.f32.mrb[7].mxu0 }
 0xefd   : > { %v1337_v62 = vld [vmem:[%s2525_s4 + $0x8] sm:$0xff] (!%p1573_p4) }
 0xefe   : > { %v1077_v63 = vadd.f32 %v1075_v61, %v2352_v21 }
 0xf00   : > { %1923 = vtanh.f32 %v1077_v63  ;;  %v1568_v1 = vmul.f32 -1.442695, %v1077_v63  ;;  %v1338_v63 = vld [vmem:[%s2525_s4 + $0x10] sm:$0xff] (!%p1573_p4) }
 0xf02   : > { %1925 = vpow2.f32 %v1568_v1 }
 0xf0a   : > { %v1924_v0 = vpop.eup %1923 }
 0xf0b   : > { %1090 = vrot.lane.b32.xlu0 %v1924_v0, %s2100_s27  ;;  %v2102_v0 = vmov (!%p1573_p4), 0.0|0.0  }
 0xf0c   : > { %v1926_v2 = vpop.eup %1925  ;;  %1799 = vmatprep.subr.bf16.mxu0 (!%p1573_p4), %v2102_v0 }
 0xf0d   : > { %v1081_v10 = vadd.f32 1.0, %v1926_v2  ;;  %v1339_v2 = vld [vmem:[%s2525_s4 + $0x18] sm:$0xff] (!%p1573_p4) }
 0xf0f   : > { %1927 = vrcp.f32 %v1081_v10  ;;  %v2105_v10 = vmov (!%p1573_p4), 0.0  }
 0xf19   : > { %v1928_v3 = vpop.eup %1927 }
 0xf1a   : > { %v1088_v16 = vmul.f32 %v1928_v3, %v1086_v6 }
 0xf7d   : > { %v1091_v15 = vpop.permute.xlu0 %1090 }
 0xf7e   : > { %v1093_v4 = vmul.f32 %v1928_v3, %v1091_v15 }
 0xf80   : > { %1095 = vrot.lane.b32.xlu1 %v1093_v4, %s2101_s17  ;;  %v1574_v4 = vld [vmem:[%s2526_s5] ss:$0 sm:$0xff] (!%p1573_p4) }
 0xff2   : > { %v1096_v5 = vpop.permute.xlu1 %1095 }
 0xff3   : > { %v1098_v7 = vadd.f32 %v1096_v5, %v1088_v16 }
 0xff5   : > { %1929 = vtanh.f32 %v1098_v7  ;;  %v1197_v30 = vrot.slane %v1098_v7, 6 }
 0xfff   : > { %v1930_v8 = vpop.eup %1929 }
0x1000   : > { %1101 = vrot.lane.b32.xlu0 %v1930_v8, %s2100_s27 }
0x1072   : > { %v1102_v9 = vpop.permute.xlu0 %1101 }
0x1073   : > { %v2429_v11 = vmul.f32 %v1928_v3, %v1102_v9  ;;  %v1803_v3 = vpack.c.bf16 (!%p1573_p4), %v1339_v2, %v1338_v63 }
0x1075   : > { %v1110_v12 = vrot.slane %v2429_v11, 2 }
0x1077   : > { %1111 = vrot.lane.b32.xlu1 %v1110_v12, %s2101_s17 }
0x10e9   : > { %v1112_v13 = vpop.permute.xlu1 %1111 }
0x10ea   : > { %1719 = vmatmul.mubr.msk.f32.vlgmr.msra.gmra.mrb[6].mxu1 %vm375_vm1, %v1112_v13 }
0x11bd   : > { %v1181_v14 = vpop.f32.mrb[6].mxu1 }
0x11be   : > { %v1186_v18 = vrot.slane %v1181_v14, 4  ;;  %v1720_v19 = vpop.f32.mrb[7].mxu1 }
0x11c0   : > { %v1188_v20 = vadd.f32 %v1186_v18, %v2352_v21 }
0x11c2   : > { %1931 = vtanh.f32 %v1188_v20  ;;  %v1570_v23 = vmul.f32 -1.442695, %v1188_v20 }
0x11c4   : > { %1933 = vpow2.f32 %v1570_v23 }
0x11cc   : > { %v1932_v22 = vpop.eup %1931 }
0x11cd   : > { %1201 = vrot.lane.b32.xlu0 %v1932_v22, %s2100_s27 }
0x11ce   : > { %v1934_v25 = vpop.eup %1933 }
0x11cf   : > { %v1192_v26 = vadd.f32 1.0, %v1934_v25 }
0x11d1   : > { %1935 = vrcp.f32 %v1192_v26 }
0x11db   : > { %v1936_v27 = vpop.eup %1935 }
0x11dc   : > { %v1199_v31 = vmul.f32 %v1936_v27, %v1197_v30 }
0x123f   : > { %v1202_v28 = vpop.permute.xlu0 %1201 }
0x1240   : > { %v1204_v29 = vmul.f32 %v1936_v27, %v1202_v28 }
0x1242   : > { %1206 = vrot.lane.b32.xlu1 %v1204_v29, %s2101_s17 }
0x12b4   : > { %v1207_v32 = vpop.permute.xlu1 %1206 }
0x12b5   : > { %v1209_v33 = vadd.f32 %v1207_v32, %v1199_v31 }
0x12b7   : > { %1937 = vtanh.f32 %v1209_v33 }
0x12c1   : > { %v1938_v34 = vpop.eup %1937 }
0x12c2   : > { %1212 = vrot.lane.b32.xlu0 %v1938_v34, %s2100_s27 }
0x1334   : > { %v1213_v35 = vpop.permute.xlu0 %1212 }
0x1335   : > { %v1215_v36 = vmul.f32 %v1936_v27, %v1213_v35 }
0x1337   : > { %v1221_v24 = vrot.slane %v1215_v36, 4 }
0x1339   : > { %1222 = vrot.lane.b32.xlu1 %v1221_v24, %s2101_s17 }
0x13ab   : > { %v1223_v37 = vpop.permute.xlu1 %1222 }
0x13ac   : > { %1730 = vmatmul.mubr.msk.f32.vlgmr.msra.gmra.mrb[8].mxu0 %vm375_vm1, %v1223_v37 }
0x13ad   : > { %1740 = vmatprep.mubr.msk.f32.mxu0 (!%p1573_p4), %vm2104_vm7, %v2105_v10 }
0x147f   : > { %v1292_v39 = vpop.f32.mrb[8].mxu0 }
0x1480   : > { %v1297_v40 = vrot.slane %v1292_v39, 2  ;;  %v1731_v41 = vpop.f32.mrb[9].mxu0 }
0x1482   : > { %v1299_v42 = vadd.f32 %v1297_v40, %v2352_v21  ;;  %v1308_v21 = vrot.slane %v1209_v33, 6 }
0x1484   : > { %1939 = vtanh.f32 %v1299_v42  ;;  %v1572_v44 = vmul.f32 -1.442695, %v1299_v42 }
0x1486   : > { %1941 = vpow2.f32 %v1572_v44 }
0x148e   : > { %v1940_v43 = vpop.eup %1939 }
0x148f   : > { %1312 = vrot.lane.b32.xlu0 %v1940_v43, %s2100_s27 }
0x1490   : > { %v1942_v45 = vpop.eup %1941 }
0x1491   : > { %v1303_v46 = vadd.f32 1.0, %v1942_v45 }
0x1493   : > { %1943 = vrcp.f32 %v1303_v46 }
0x149d   : > { %v1944_v47 = vpop.eup %1943 }
0x149e   : > { %v1310_v50 = vmul.f32 %v1944_v47, %v1308_v21 }
0x1501   : > { %v1313_v48 = vpop.permute.xlu0 %1312 }
0x1502   : > { %v1315_v49 = vmul.f32 %v1944_v47, %v1313_v48 }
0x1504   : > { %1317 = vrot.lane.b32.xlu1 %v1315_v49, %s2101_s17 }
0x1508   : > { %665 = vrot.lane.b32.xlu1 %v2373_v57, %s2101_s17 }
0x150c   : > { %889 = vrot.lane.b32.xlu1 %v2403_v38, %s2101_s17 }
0x1510   : > { %1217 = vrot.lane.b32.xlu1 %v1215_v36, %s2101_s17 }
0x1576   : > { %v1318_v51 = vpop.permute.xlu1 %1317 }
0x1577   : > { %v1320_v52 = vadd.f32 %v1318_v51, %v1310_v50 }
0x1579   : > { %1945 = vtanh.f32 %v1320_v52 }
0x157a   : > { %v666_v53 = vpop.permute.xlu1 %665 }
0x157b   : > { %669 = vst.msk [vmem:[#allocation2] sm:$0xc] %vm668_vm4, %v666_v53 }
0x157e   : > { %v890_v54 = vpop.permute.xlu1 %889 }
0x157f   : > { %893 = vst.msk [vmem:[#allocation2] sm:$0xc0] %vm892_vm5, %v890_v54 }
0x1582   : > { %v1218_v57 = vpop.permute.xlu1 %1217 }
0x1583   : > { %v1946_v55 = vpop.eup %1945  ;;  %1220 = vst.msk [vmem:[#allocation2 + $0x8] sm:$0x30] %vm780_vm6, %v1218_v57 }
0x1584   : > { %1323 = vrot.lane.b32.xlu0 %v1946_v55, %s2100_s27 }
0x1588   : > { %777 = vrot.lane.b32.xlu0 %v2388_v17, %s2101_s17  ;;  %v1336_v17 = vld [vmem:[%s2525_s4] sm:$0xff] (!%p1573_p4) }
0x1589   : > { %v1800_v1 = vpack.c.bf16 (!%p1573_p4), %v1337_v62, %v1336_v17 }
0x158b   : > { %1801 = vmatpush3.bf16.msra.mxu0 (!%p1573_p4), %v1800_v1 }
0x158c   : > { %1106 = vrot.lane.b32.xlu0 %v2429_v11, %s2101_s17  ;;  %1802 = vmatprep.subr.bf16.mxu0 (!%p1573_p4), %v2102_v0 }
0x158f   : > { %1804 = vmatpush3.bf16.msra.mxu0 (!%p1573_p4), %v1803_v3 }
0x15f6   : > { %v1324_v38 = vpop.permute.xlu0 %1323 }
0x15f7   : > { %v1326_v56 = vmul.f32 %v1944_v47, %v1324_v38 }
0x15f9   : > { %1328 = vrot.lane.b32.xlu0 %v1326_v56, %s2101_s17  ;;  %v1347_v61 = vrot.slane (!%p1573_p4), %v1326_v56, 6 }
0x15fa   : > { %v778_v58 = vpop.permute.xlu0 %777 }
0x15fb   : > { %781 = vst.msk [vmem:[#allocation2] sm:$0x30] %vm780_vm6, %v778_v58 }
0x15fd   : > { %1348 = vrot.lane.b32.xlu0 (!%p1573_p4), %v1347_v61, %s2103_s24 }
0x15fe   : > { %v1107_v59 = vpop.permute.xlu0 %1106 }
0x15ff   : > { %1109 = vst.msk [vmem:[#allocation2 + $0x8] sm:$0xc] %vm668_vm4, %v1107_v59 }
0x1666   : > { %1335 = sbr.rel (%p1573_p4) target bundleno = 5959 (0x1747), region = 60 }
0x166b   : > { %v1329_v60 = vpop.permute.xlu0 %1328 }
0x166c   : > { %1331 = vst.msk [vmem:[#allocation2 + $0x8] sm:$0xc0] %vm892_vm5, %v1329_v60 }
0x166f   : > { %v1349_v15 = vpop.permute.xlu0 %1348 }
0x1670   : > { %1741 = vmatmul.mubr.msk.f32.vlgmr.msra.gmra.mrb[0].mxu0 %vm375_vm1, %v1349_v15 }
0x1743   : > { %v1418_v6 = vpop.f32.mrb[0].mxu0 }
0x1744   : > { %v1419_v16 = vadd.f32 %v1574_v4, %v1418_v6  ;;  %v1742_v5 = vpop.f32.mrb[1].mxu0 }
0x1746   : > { %1423 = vst.msk [vmem:[#allocation8] sm:$0x3] %vm1422_vm8, %v1419_v16 }
0x1747 PF: > { %s2535_s15 = sadd.s32 4294967295, %s2091_s26   ;;  %s2106_s12 = smov [#allocation8]  }
0x1748   : > { %p2477_p8 = scmp.eq.s32.totalorder %s2535_s15, 1  ;;  %s1433_s21 = sshll.u32 %s2106_s12, 4  ;;  %s1434_s21 = int_to_ptr.vmem [resolvable:$true] %s1433_s21 }
0x1749   : > { %s2007_s19 = scalar_lea.vmem %s1434_s21, 32  ;;  %p2014_p3 = scmp.lt.s32.totalorder %s1434_s21, %s1434_s21 }
0x174a   : > { %p2008_p1 = scmp.ne.s32.totalorder %s1434_s21, %s2007_s19  ;;  %p2015_p5 = scmp.lt.s32.totalorder %s2007_s19, %s2007_s19 }
0x174c   : > { %p2009_p2 = pnand %p2008_p1, %p2477_p8  ;;  %p2016_p6 = por %p2015_p5, %p2014_p3 }
0x174e   : > { %p2010_p13 = pneg %p2009_p2 }
0x1750   : > { %p2017_p10 = pnand %p2016_p6, %p2010_p13 }
0x1752   : > { %2020 = shalt.err (!%p2017_p10)
}
0x1753   : > { %s2021_s13 = scalar_lea.hbm %s2527_s6, 32 }
0x1754   : > { %p2022_p12 = scmp.ne.s32.totalorder %s2527_s6, %s2021_s13  ;;  %p2027_p9 = scmp.lt.u32.totalorder %s2021_s13, %s2527_s6 }
0x1756   : > { %p2023_p0 = pnand %p2022_p12, %p2477_p8 }
0x1758   : > { %p2024_p7 = pneg %p2023_p0 }
0x175a   : > { %p2029_p11 = pnand %p2027_p9, %p2024_p7 }
0x175c   : > { %2032 = shalt.err (!%p2029_p11)
}
0x175d   : > { %1810 = dma.vmem_to_hbm [thread:$0]  (%p2477_p8), %s1434_s21, 32, %s2527_s6, [#allocation5]  }
0x175e   : > { %2066 = dma.done.wait (%p2477_p8), [#allocation5], 32  }
0x175f   : > { %2068 = vsyncadd (%p2477_p8), [#allocation5], 4294967264 }
0x1760 PF: > { %s23_s26 = sadd.s32 1, %s2091_s26   ;;  %s2537_s21 = smov %s2075_s22 }
0x1761   : > { %p20_p4 = scmp.ge.s32.totalorder %s23_s26, 4   ;;  %s2538_s22 = smov %s2079_s23 }
0x1762   : > { %s2539_s23 = smov %s2193_s9  ;;  %s2540_s24 = smov %s2087_s25 }
0x1763   : > { %s2541_s25 = smov %s2543_s28  ;;  %22 = sbr.rel (!%p20_p4) target bundleno = 7 (0x7), region = 109 }
0x176a   :  { %1446 = vsyncpa [#allocation4], 1 }
0x176b   :  { %1448 = vsyncpa [#allocation4 + $0x1], 1 }
0x176c   :  { %1449 = vsyncpa [#allocation7], 1 }
0x176d   :  { %1451 = vsyncpa [#allocation7 + $0x1], 1 }
0x176e   :  { %1452 = vsyncpa [#allocation5], 1 }
0x176f   :  { %1454 = vsyncpa [#allocation5 + $0x1], 1 }

</bundles_post_ra>
